<compile_context>
chip_gen: v7x
topology: tpu7x:2x2x1
jax: 0.10.0
libtpu: 0.0.40
codegen_flags: <defaults>
</compile_context>

<pallas_src>
import functools
import math

import jax
import jax.numpy as jnp
from jax.experimental import pallas as pl
from jax.experimental.pallas import tpu as pltpu

_LANES = 128
_MAX_FOLDED_WIDTH = 512      # cap folded feature width at 4 vregs
_BN_EPS = 1e-5


def _round_up(v, m):
    return (v + m - 1) // m * m


def _tpu_config():
    """(tensorcores_per_chip, per-x-buffer VMEM budget, scoped VMEM limit)."""
    try:
        kind = jax.devices()[0].device_kind.lower()
    except Exception:
        kind = ""
    is_v7 = "7" in kind
    # v7x (and v4/v5p megacore chips) expose 2 TensorCores to one program;
    # v5e / v6e have a single TensorCore -> a core axis is pure overhead there.
    num_cores = 2 if (is_v7 or "v4" in kind or "v5p" in kind) else 1
    if is_v7:
        # 64 MiB physical VMEM per TC on v7x: stay conservative.
        return num_cores, 8 * 1024 * 1024, 48 * 1024 * 1024
    # v5e / v6e: 128 MiB physical VMEM -> bigger streaming tiles.
    return num_cores, 16 * 1024 * 1024, 64 * 1024 * 1024


def _sublane_quantum(itemsize):
    # f32 -> 8 rows, bf16 -> 16, int8/fp8 -> 32 (dtype packing quantum).
    return {4: 8, 2: 16, 1: 32}.get(int(itemsize), 8)


def _choose_fold(seq, feat):
    """Smallest fold F with F*feat % 128 == 0, keeping the reshape copy-free."""
    if feat >= _LANES:
        return 1
    f0 = _LANES // math.gcd(feat, _LANES)        # = lcm(feat, 128) // feat
    if f0 * feat > _MAX_FOLDED_WIDTH:
        return 1
    if seq % f0 != 0:
        return 1                                 # keep (B,S,D)->(B,S//F,F*D) a view
    return f0


# ---------------------------------------------------------------------------
# Shared kernel pieces
# ---------------------------------------------------------------------------
def _tile_sum(x_tile, tile_start_row, n_valid_rows, needs_mask):
    """Sum one (tb, ts, FD) tile over its sequence axis, masking the ragged
    tail (rows whose global index >= n_valid_rows contain garbage)."""
    xt = x_tile.astype(jnp.float32)
    if needs_mask:
        row = jax.lax.broadcasted_iota(jnp.int32, xt.shape, 1)
        xt = jnp.where(row < (n_valid_rows - tile_start_row), xt, 0.0)
    return jnp.sum(xt, axis=1)                   # (tb, FD) f32


def _bn_mlp(tot, foldmat, gamma, beta, w1, b1, w2, b2, inv_n):
    """tot: (B, FD) f32 sequence-sum -> BatchNorm(batch stats) -> MLP."""
    pooled = jnp.dot(tot, foldmat, preferred_element_type=jnp.float32) * inv_n
    mu = jnp.mean(pooled, axis=0, keepdims=True)
    var = jnp.mean((pooled - mu) ** 2, axis=0, keepdims=True)   # biased var
    xn = (pooled - mu) * jax.lax.rsqrt(var + _BN_EPS)
    xn = xn * gamma + beta
    h = jnp.maximum(jnp.dot(xn, w1, preferred_element_type=jnp.float32) + b1, 0.0)
    return jnp.dot(h, w2, preferred_element_type=jnp.float32) + b2


# ---------------------------------------------------------------------------
# Kernel A (single-core / single-batch-tile): fused streaming sum + epilogue.
# ---------------------------------------------------------------------------
def _fused_kernel(x_ref, foldmat_ref, gamma_ref, beta_ref, w1_ref, b1_ref,
                  w2_ref, b2_ref, o_ref, acc_ref, *, s2, ts, spc, needs_mask,
                  inv_n):
    s = pl.program_id(0)

    @pl.when(s == 0)
    def _():
        acc_ref[...] = jnp.zeros_like(acc_ref)

    acc_ref[...] += _tile_sum(x_ref[...], s * ts, s2, needs_mask)

    @pl.when(s == spc - 1)
    def _():
        out = _bn_mlp(acc_ref[...], foldmat_ref[...], gamma_ref[...],
                      beta_ref[...], w1_ref[...], b1_ref[...], w2_ref[...],
                      b2_ref[...], inv_n)
        o_ref[...] = out.astype(o_ref.dtype)


# ---------------------------------------------------------------------------
# Kernel B1 (multi-core / batch-tiled): streaming per-core partial sums.
# ---------------------------------------------------------------------------
def _pool_sum_kernel(x_ref, part_ref, *, s2, ts, spc, needs_mask):
    c = pl.program_id(1)
    s = pl.program_id(2)

    @pl.when(s == 0)
    def _():
        part_ref[...] = jnp.zeros_like(part_ref)

    part_ref[...] += _tile_sum(x_ref[...], (c * spc + s) * ts, s2, needs_mask)


# ---------------------------------------------------------------------------
# Kernel B2: combine partials -> BN (batch stats) -> Linear -> ReLU -> Linear.
# ---------------------------------------------------------------------------
def _bn_mlp_kernel(part_ref, foldmat_ref, gamma_ref, beta_ref, w1_ref, b1_ref,
                   w2_ref, b2_ref, o_ref, *, inv_n):
    tot = jnp.sum(part_ref[...], axis=0)         # (B, FD) f32
    out = _bn_mlp(tot, foldmat_ref[...], gamma_ref[...], beta_ref[...],
                  w1_ref[...], b1_ref[...], w2_ref[...], b2_ref[...], inv_n)
    o_ref[...] = out.astype(o_ref.dtype)


# ---------------------------------------------------------------------------
# Wrapper
# ---------------------------------------------------------------------------
@functools.partial(jax.jit,
                   static_argnames=("num_cores", "x_tile_bytes",
                                    "force_two_calls"))
def lstm_forward(x, gamma, beta, w1, b1, w2, b2, *,
                 num_cores=None, x_tile_bytes=None, force_two_calls=False):
    B, S, D = x.shape
    H = w1.shape[1]
    O = w2.shape[1]
    itemsize = jnp.dtype(x.dtype).itemsize
    quantum = _sublane_quantum(itemsize)

    cfg_cores, cfg_tile_bytes, vmem_limit = _tpu_config()
    if num_cores is None:
        num_cores = cfg_cores
    if x_tile_bytes is None:
        x_tile_bytes = cfg_tile_bytes

    # ---- lane fold: copy-free view (B, S, D) -> (B, S2, FD), FD % 128 == 0 ----
    fold = _choose_fold(S, D)
    FD = fold * D
    S2 = S // fold
    x2 = x.reshape(B, S2, FD) if fold > 1 else x

    # ---- dtype-aware tile sizing from an explicit per-buffer VMEM budget ----
    if B * quantum * FD * itemsize <= x_tile_bytes:
        tb = B                                            # no batch tiling
    else:
        tb = max(8, (x_tile_bytes // (quantum * FD * itemsize)) // 8 * 8)
    b_tiles = pl.cdiv(B, tb)

    rows_budget = max(
        quantum, (x_tile_bytes // (tb * FD * itemsize)) // quantum * quantum)
    ts = S2 if rows_budget >= S2 else rows_budget         # rows per seq tile
    num_tiles = pl.cdiv(S2, ts)
    n_cores = max(1, min(num_cores, num_tiles))
    spc = pl.cdiv(num_tiles, n_cores)                     # seq tiles per core
    needs_mask = (num_tiles * ts != S2) or (n_cores * spc != num_tiles)
    last_tile = num_tiles - 1
    inv_n = 1.0 / float(S)

    # ---- fold matrix + lane-padded MLP weights (dense matmuls & store) ----
    foldmat = (jnp.arange(FD, dtype=jnp.int32)[:, None] % D
               == jnp.arange(D, dtype=jnp.int32)[None, :]).astype(jnp.float32)
    Hp = _round_up(H, _LANES)
    Op = _round_up(O, _LANES)
    w1p = jnp.pad(w1, ((0, 0), (0, Hp - H)))
    b1p = jnp.pad(b1, ((0, 0), (0, Hp - H)))
    w2p = jnp.pad(w2, ((0, Hp - H), (0, Op - O)))
    b2p = jnp.pad(b2, ((0, 0), (0, Op - O)))
    small = (foldmat, gamma, beta, w1p, b1p, w2p, b2p)

    x_bytes = B * S2 * FD * itemsize
    fuse = (n_cores == 1) and (b_tiles == 1) and (not force_two_calls)

    if fuse:
        # Single launch: streaming reduction + BN/MLP epilogue on last step.
        small_specs = [pl.BlockSpec(a.shape, lambda s: (0, 0)) for a in small]
        out = pl.pallas_call(
            functools.partial(_fused_kernel, s2=S2, ts=ts, spc=spc,
                              needs_mask=needs_mask, inv_n=inv_n),
            out_shape=jax.ShapeDtypeStruct((B, Op), jnp.float32),
            grid_spec=pltpu.PrefetchScalarGridSpec(
                num_scalar_prefetch=0,
                grid=(spc,),
                # NOTE: bump to pipeline_mode=pl.Buffered(3) only if an xprof
                # trace shows exposed DMA at tile boundaries (sweep 2 vs 3).
                in_specs=[pl.BlockSpec((B, ts, FD), lambda s: (0, s, 0))]
                         + small_specs,
                out_specs=pl.BlockSpec((B, Op), lambda s: (0, 0)),
                scratch_shapes=[pltpu.VMEM((B, FD), jnp.float32)]),
            compiler_params=pltpu.CompilerParams(
                dimension_semantics=("arbitrary",),
                vmem_limit_bytes=vmem_limit),
            cost_estimate=pl.CostEstimate(
                flops=B * S2 * FD + 2 * B * (D * Hp + Hp * Op),
                transcendentals=0,
                bytes_accessed=x_bytes + B * Op * 4),
        )(x2, *small)
        return out[:, :O]

    # Two-call path (v7x cross-core split and/or batch tiling).
    partials = pl.pallas_call(
        functools.partial(_pool_sum_kernel, s2=S2, ts=ts, spc=spc,
                          needs_mask=needs_mask),
        out_shape=jax.ShapeDtypeStruct((n_cores, B, FD), jnp.float32),
        grid_spec=pltpu.PrefetchScalarGridSpec(
            num_scalar_prefetch=0,
            grid=(b_tiles, n_cores, spc),
            # Clamp would-be out-of-range sequence tiles to the last valid
            # tile; their contribution is fully masked in the kernel.
            in_specs=[pl.BlockSpec(
                (tb, ts, FD),
                lambda b, c, s: (b, jnp.minimum(c * spc + s, last_tile), 0))],
            out_specs=pl.BlockSpec((None, tb, FD), lambda b, c, s: (c, b, 0))),
        compiler_params=pltpu.CompilerParams(
            dimension_semantics=("parallel", "parallel", "arbitrary"),
            vmem_limit_bytes=vmem_limit),
        cost_estimate=pl.CostEstimate(
            flops=B * S2 * FD,
            transcendentals=0,
            bytes_accessed=x_bytes + n_cores * B * FD * 4),
    )(x2)

    out = pl.pallas_call(
        functools.partial(_bn_mlp_kernel, inv_n=inv_n),
        out_shape=jax.ShapeDtypeStruct((B, Op), jnp.float32),
        in_specs=[pl.BlockSpec(memory_space=pltpu.VMEM)] * 8,
        out_specs=pl.BlockSpec(memory_space=pltpu.VMEM),
        compiler_params=pltpu.CompilerParams(
            vmem_limit_bytes=32 * 1024 * 1024),
    )(partials, *small)
    return out[:, :O]


# ---------------------------------------------------------------------------
# Params / reference
# ---------------------------------------------------------------------------
def init_params(key, input_size, hidden_size, output_size):
    """Deterministic parameter init (PyTorch-Linear-style uniform bounds)."""
    k1, k2, k3, k4 = jax.random.split(key, 4)
    lim1 = 1.0 / jnp.sqrt(input_size)
    lim2 = 1.0 / jnp.sqrt(hidden_size)
    gamma = jnp.ones((1, input_size), jnp.float32)     # BatchNorm affine
    beta = jnp.zeros((1, input_size), jnp.float32)
    # Linear weights stored pre-transposed as [in, out].
    w1 = jax.random.uniform(k1, (input_size, hidden_size), jnp.float32, -lim1, lim1)
    b1 = jax.random.uniform(k2, (1, hidden_size), jnp.float32, -lim1, lim1)
    w2 = jax.random.uniform(k3, (hidden_size, output_size), jnp.float32, -lim2, lim2)
    b2 = jax.random.uniform(k4, (1, output_size), jnp.float32, -lim2, lim2)
    return gamma, beta, w1, b1, w2, b2


def reference_forward(x, gamma, beta, w1, b1, w2, b2):
    pooled = jnp.mean(x, axis=1)
    mu = jnp.mean(pooled, axis=0, keepdims=True)
    var = jnp.mean((pooled - mu) ** 2, axis=0, keepdims=True)
    xn = (pooled - mu) / jnp.sqrt(var + _BN_EPS) * gamma + beta
    h = jnp.maximum(xn @ w1 + b1, 0.0)
    return h @ w2 + b2


if __name__ == "__main__":
    H, O = 32, 8

    # Config 1: lane-folded, single-tile, fused path.  x: [4, 128, 16].
    B, S, D = 4, 128, 16
    key = jax.random.PRNGKey(0)
    kx, kp = jax.random.split(key)
    x = jax.random.normal(kx, (B, S, D), jnp.float32)
    params = init_params(kp, D, H, O)
    out = jax.block_until_ready(lstm_forward(x, *params))
    ref = reference_forward(x, *params)
    assert out.shape == (B, O)
    assert jnp.allclose(out, ref, atol=1e-4, rtol=1e-4), float(
        jnp.max(jnp.abs(out - ref)))

    # Config 2: ragged sequence + forced 2-way core split + two-call path
    # (exercises tail masking, clamped index_map and the partial combine).
    B2, S2c, D2 = 3, 136, 16
    x2 = jax.random.normal(jax.random.PRNGKey(1), (B2, S2c, D2), jnp.float32)
    params2 = init_params(jax.random.PRNGKey(2), D2, H, O)
    out2 = jax.block_until_ready(
        lstm_forward(x2, *params2, num_cores=2,
                     x_tile_bytes=B2 * 8 * 128 * 4, force_two_calls=True))
    ref2 = reference_forward(x2, *params2)
    assert jnp.allclose(out2, ref2, atol=1e-4, rtol=1e-4), float(
        jnp.max(jnp.abs(out2 - ref2)))

    # Config 3: feature size that cannot be lane-folded (fold == 1 path).
    B3, S3, D3 = 4, 50, 10
    x3 = jax.random.normal(jax.random.PRNGKey(3), (B3, S3, D3), jnp.float32)
    params3 = init_params(jax.random.PRNGKey(4), D3, H, O)
    out3 = jax.block_until_ready(lstm_forward(x3, *params3))
    ref3 = reference_forward(x3, *params3)
    assert jnp.allclose(out3, ref3, atol=1e-4, rtol=1e-4), float(
        jnp.max(jnp.abs(out3 - ref3)))

    print("KERNEL_OK")
</pallas_src>

<mosaic_0001>
module attributes {stable_mosaic.version = 11 : i64} {
  func.func @_fused_kernel(%arg0: i32, %arg1: memref<4x16x128xf32, #tpu.memory_space<vmem>>, %arg2: memref<128x16xf32, #tpu.memory_space<vmem>>, %arg3: memref<1x16xf32, #tpu.memory_space<vmem>>, %arg4: memref<1x16xf32, #tpu.memory_space<vmem>>, %arg5: memref<16x128xf32, #tpu.memory_space<vmem>>, %arg6: memref<1x128xf32, #tpu.memory_space<vmem>>, %arg7: memref<128x128xf32, #tpu.memory_space<vmem>>, %arg8: memref<1x128xf32, #tpu.memory_space<vmem>>, %arg9: memref<4x128xf32, #tpu.memory_space<vmem>>, %arg10: memref<4x128xf32, #tpu.memory_space<vmem>>) attributes {dimension_semantics = [#tpu.dimension_semantics<arbitrary>], iteration_bounds = array<i64: 1>, scalar_prefetch = 0 : i64, scratch_operands = 1 : i64, tpu.core_type = #tpu.core_type<tc>, window_params = [{transform_indices = @transform_0, window_bounds = array<i64: 4, 16, 128>}, {pipeline_mode = #tpu.pipeline_mode<synchronous>, transform_indices = @transform_1, window_bounds = array<i64: 128, 16>}, {pipeline_mode = #tpu.pipeline_mode<synchronous>, transform_indices = @transform_2, window_bounds = array<i64: 1, 16>}, {pipeline_mode = #tpu.pipeline_mode<synchronous>, transform_indices = @transform_3, window_bounds = array<i64: 1, 16>}, {pipeline_mode = #tpu.pipeline_mode<synchronous>, transform_indices = @transform_4, window_bounds = array<i64: 16, 128>}, {pipeline_mode = #tpu.pipeline_mode<synchronous>, transform_indices = @transform_5, window_bounds = array<i64: 1, 128>}, {pipeline_mode = #tpu.pipeline_mode<synchronous>, transform_indices = @transform_6, window_bounds = array<i64: 128, 128>}, {pipeline_mode = #tpu.pipeline_mode<synchronous>, transform_indices = @transform_7, window_bounds = array<i64: 1, 128>}, {pipeline_mode = #tpu.pipeline_mode<synchronous>, transform_indices = @transform_8, window_bounds = array<i64: 4, 128>}]} {
    %c0_i32 = arith.constant 0 : i32
    %0 = arith.cmpi eq, %arg0, %c0_i32 : i32
    %1 = arith.extui %0 : i1 to i32
    %c0_i32_0 = arith.constant 0 : i32
    %2 = arith.cmpi ne, %1, %c0_i32_0 : i32
    scf.if %2 {
      %cst_9 = arith.constant 0.000000e+00 : f32
      %11 = vector.broadcast %cst_9 : f32 to vector<4x128xf32>
      %c0_10 = arith.constant 0 : index
      %c0_11 = arith.constant 0 : index
      %12 = vector.load %arg10[%c0_10, %c0_11] : memref<4x128xf32, #tpu.memory_space<vmem>>, vector<4x128xf32>
      tpu.vector_store %arg10[%c0_10, %c0_11], %11 {strides = array<i32>} : memref<4x128xf32, #tpu.memory_space<vmem>>, vector<4x128xf32>,
    } else {
    }
    %c0 = arith.constant 0 : index
    %c0_1 = arith.constant 0 : index
    %3 = vector.load %arg10[%c0, %c0_1] : memref<4x128xf32, #tpu.memory_space<vmem>>, vector<4x128xf32>
    %c0_2 = arith.constant 0 : index
    %c0_3 = arith.constant 0 : index
    %c0_4 = arith.constant 0 : index
    %4 = vector.load %arg1[%c0_2, %c0_3, %c0_4] : memref<4x16x128xf32, #tpu.memory_space<vmem>>, vector<4x16x128xf32>
    %cst = arith.constant dense<0.000000e+00> : vector<4x128xf32>
    %5 = vector.multi_reduction <add>, %4, %cst [1] : vector<4x16x128xf32> to vector<4x128xf32>
    %6 = arith.addf %3, %5 : vector<4x128xf32>
    %c0_5 = arith.constant 0 : index
    %c0_6 = arith.constant 0 : index
    %7 = vector.load %arg10[%c0_5, %c0_6] : memref<4x128xf32, #tpu.memory_space<vmem>>, vector<4x128xf32>
    tpu.vector_store %arg10[%c0_5, %c0_6], %6 {strides = array<i32>} : memref<4x128xf32, #tpu.memory_space<vmem>>, vector<4x128xf32>,
    %c0_i32_7 = arith.constant 0 : i32
    %8 = arith.cmpi eq, %arg0, %c0_i32_7 : i32
    %9 = arith.extui %8 : i1 to i32
    %c0_i32_8 = arith.constant 0 : i32
    %10 = arith.cmpi ne, %9, %c0_i32_8 : i32
    scf.if %10 {
      %c0_9 = arith.constant 0 : index
      %c0_10 = arith.constant 0 : index
      %11 = vector.load %arg10[%c0_9, %c0_10] : memref<4x128xf32, #tpu.memory_space<vmem>>, vector<4x128xf32>
      %c0_11 = arith.constant 0 : index
      %c0_12 = arith.constant 0 : index
      %12 = vector.load %arg2[%c0_11, %c0_12] : memref<128x16xf32, #tpu.memory_space<vmem>>, vector<128x16xf32>
      %c0_13 = arith.constant 0 : index
      %c0_14 = arith.constant 0 : index
      %13 = vector.load %arg3[%c0_13, %c0_14] : memref<1x16xf32, #tpu.memory_space<vmem>>, vector<1x16xf32>
      %c0_15 = arith.constant 0 : index
      %c0_16 = arith.constant 0 : index
      %14 = vector.load %arg4[%c0_15, %c0_16] : memref<1x16xf32, #tpu.memory_space<vmem>>, vector<1x16xf32>
      %c0_17 = arith.constant 0 : index
      %c0_18 = arith.constant 0 : index
      %15 = vector.load %arg5[%c0_17, %c0_18] : memref<16x128xf32, #tpu.memory_space<vmem>>, vector<16x128xf32>
      %c0_19 = arith.constant 0 : index
      %c0_20 = arith.constant 0 : index
      %16 = vector.load %arg6[%c0_19, %c0_20] : memref<1x128xf32, #tpu.memory_space<vmem>>, vector<1x128xf32>
      %c0_21 = arith.constant 0 : index
      %c0_22 = arith.constant 0 : index
      %17 = vector.load %arg7[%c0_21, %c0_22] : memref<128x128xf32, #tpu.memory_space<vmem>>, vector<128x128xf32>
      %c0_23 = arith.constant 0 : index
      %c0_24 = arith.constant 0 : index
      %18 = vector.load %arg8[%c0_23, %c0_24] : memref<1x128xf32, #tpu.memory_space<vmem>>, vector<1x128xf32>
      %cst_25 = arith.constant dense<0.000000e+00> : vector<4x16xf32>
      %19 = tpu.matmul %11, %12, %cst_25 {dimension_numbers = #tpu.dot_dimension_numbers<[1], [0], [0], [1], [0, 0, 1, 1], [], []>} : vector<4x128xf32>, vector<128x16xf32>, vector<4x16xf32> -> vector<4x16xf32>
      %cst_26 = arith.constant 7.812500e-03 : f32
      %20 = vector.broadcast %cst_26 : f32 to vector<4x16xf32>
      %21 = arith.mulf %19, %20 : vector<4x16xf32>
      %cst_27 = arith.constant dense<0.000000e+00> : vector<16xf32>
      %22 = vector.multi_reduction <add>, %21, %cst_27 [0] : vector<4x16xf32> to vector<16xf32>
      %23 = vector.shape_cast %22 : vector<16xf32> to vector<1x16xf32>
      %cst_28 = arith.constant 4.000000e+00 : f32
      %24 = vector.broadcast %cst_28 : f32 to vector<1x16xf32>
      %25 = arith.divf %23, %24 : vector<1x16xf32>
      %26 = vector.broadcast %25 : vector<1x16xf32> to vector<4x16xf32>
      %27 = arith.subf %21, %26 : vector<4x16xf32>
      %28 = arith.mulf %27, %27 : vector<4x16xf32>
      %cst_29 = arith.constant dense<0.000000e+00> : vector<16xf32>
      %29 = vector.multi_reduction <add>, %28, %cst_29 [0] : vector<4x16xf32> to vector<16xf32>
      %30 = vector.shape_cast %29 : vector<16xf32> to vector<1x16xf32>
      %cst_30 = arith.constant 4.000000e+00 : f32
      %31 = vector.broadcast %cst_30 : f32 to vector<1x16xf32>
      %32 = arith.divf %30, %31 : vector<1x16xf32>
      %33 = vector.broadcast %25 : vector<1x16xf32> to vector<4x16xf32>
      %34 = arith.subf %21, %33 : vector<4x16xf32>
      %cst_31 = arith.constant 9.99999974E-6 : f32
      %35 = vector.broadcast %cst_31 : f32 to vector<1x16xf32>
      %36 = arith.addf %32, %35 : vector<1x16xf32>
      %37 = math.rsqrt %36 : vector<1x16xf32>
      %38 = vector.broadcast %37 : vector<1x16xf32> to vector<4x16xf32>
      %39 = arith.mulf %34, %38 : vector<4x16xf32>
      %40 = vector.broadcast %13 : vector<1x16xf32> to vector<4x16xf32>
      %41 = arith.mulf %39, %40 : vector<4x16xf32>
      %42 = vector.broadcast %14 : vector<1x16xf32> to vector<4x16xf32>
      %43 = arith.addf %41, %42 : vector<4x16xf32>
      %cst_32 = arith.constant dense<0.000000e+00> : vector<4x128xf32>
      %44 = tpu.matmul %43, %15, %cst_32 {dimension_numbers = #tpu.dot_dimension_numbers<[1], [0], [0], [1], [0, 0, 1, 1], [], []>} : vector<4x16xf32>, vector<16x128xf32>, vector<4x128xf32> -> vector<4x128xf32>
      %45 = vector.broadcast %16 : vector<1x128xf32> to vector<4x128xf32>
      %46 = arith.addf %44, %45 : vector<4x128xf32>
      %cst_33 = arith.constant 0.000000e+00 : f32
      %47 = vector.broadcast %cst_33 : f32 to vector<4x128xf32>
      %48 = arith.maximumf %46, %47 : vector<4x128xf32>
      %cst_34 = arith.constant dense<0.000000e+00> : vector<4x128xf32>
      %49 = tpu.matmul %48, %17, %cst_34 {dimension_numbers = #tpu.dot_dimension_numbers<[1], [0], [0], [1], [0, 0, 1, 1], [], []>} : vector<4x128xf32>, vector<128x128xf32>, vector<4x128xf32> -> vector<4x128xf32>
      %50 = vector.broadcast %18 : vector<1x128xf32> to vector<4x128xf32>
      %51 = arith.addf %49, %50 : vector<4x128xf32>
      %c0_35 = arith.constant 0 : index
      %c0_36 = arith.constant 0 : index
      %52 = vector.load %arg9[%c0_35, %c0_36] : memref<4x128xf32, #tpu.memory_space<vmem>>, vector<4x128xf32>
      tpu.vector_store %arg9[%c0_35, %c0_36], %51 {strides = array<i32>} : memref<4x128xf32, #tpu.memory_space<vmem>>, vector<4x128xf32>,
    } else {
    }
    return
  }
  func.func @transform_0(%arg0: i32) -> (i32, i32, i32) {
    %c0_i32 = arith.constant 0 : i32
    %c0_i32_0 = arith.constant 0 : i32
    %c0_i32_1 = arith.constant 0 : i32
    return %c0_i32, %arg0, %c0_i32_0 : i32, i32, i32
  }
  func.func @transform_1(%arg0: i32) -> (i32, i32) {
    %c0_i32 = arith.constant 0 : i32
    %c0_i32_0 = arith.constant 0 : i32
    %c0_i32_1 = arith.constant 0 : i32
    return %c0_i32, %c0_i32_0 : i32, i32
  }
  func.func @transform_2(%arg0: i32) -> (i32, i32) {
    %c0_i32 = arith.constant 0 : i32
    %c0_i32_0 = arith.constant 0 : i32
    %c0_i32_1 = arith.constant 0 : i32
    return %c0_i32, %c0_i32_0 : i32, i32
  }
  func.func @transform_3(%arg0: i32) -> (i32, i32) {
    %c0_i32 = arith.constant 0 : i32
    %c0_i32_0 = arith.constant 0 : i32
    %c0_i32_1 = arith.constant 0 : i32
    return %c0_i32, %c0_i32_0 : i32, i32
  }
  func.func @transform_4(%arg0: i32) -> (i32, i32) {
    %c0_i32 = arith.constant 0 : i32
    %c0_i32_0 = arith.constant 0 : i32
    %c0_i32_1 = arith.constant 0 : i32
    return %c0_i32, %c0_i32_0 : i32, i32
  }
  func.func @transform_5(%arg0: i32) -> (i32, i32) {
    %c0_i32 = arith.constant 0 : i32
    %c0_i32_0 = arith.constant 0 : i32
    %c0_i32_1 = arith.constant 0 : i32
    return %c0_i32, %c0_i32_0 : i32, i32
  }
  func.func @transform_6(%arg0: i32) -> (i32, i32) {
    %c0_i32 = arith.constant 0 : i32
    %c0_i32_0 = arith.constant 0 : i32
    %c0_i32_1 = arith.constant 0 : i32
    return %c0_i32, %c0_i32_0 : i32, i32
  }
  func.func @transform_7(%arg0: i32) -> (i32, i32) {
    %c0_i32 = arith.constant 0 : i32
    %c0_i32_0 = arith.constant 0 : i32
    %c0_i32_1 = arith.constant 0 : i32
    return %c0_i32, %c0_i32_0 : i32, i32
  }
  func.func @transform_8(%arg0: i32) -> (i32, i32) {
    %c0_i32 = arith.constant 0 : i32
    %c0_i32_0 = arith.constant 0 : i32
    %c0_i32_1 = arith.constant 0 : i32
    return %c0_i32, %c0_i32_0 : i32, i32
  }
}

</mosaic_0001>

<bundles_post_ra>
// kernel: lstm_forward.1
= control target key start
LH: loop header
LB: loop body
LE: loop exit
PB: predicated region body
PF: predicated region fallthrough
CT: control target
= control target key end

     0   :  { %13 = vsyncpa [#allocation4], 0  ;;  %s1134_s0 = inlined_call_operand.hbm [shape: f32[4,16,128], index: 0, kind: input, shape index: {}]   ;;  %s1135_s1 = inlined_call_operand.hbm [shape: f32[128,16], index: 1, kind: input, shape index: {}]   ;;  %s1136_s2 = inlined_call_operand.hbm [shape: f32[1,16], index: 2, kind: input, shape index: {}]   ;;  %s1137_s3 = inlined_call_operand.hbm [shape: f32[1,16], index: 3, kind: input, shape index: {}]   ;;  %s1138_s4 = inlined_call_operand.hbm [shape: f32[16,128], index: 4, kind: input, shape index: {}]   ;;  %s1139_s5 = inlined_call_operand.hbm [shape: f32[1,128], index: 5, kind: input, shape index: {}]   ;;  %s1140_s6 = inlined_call_operand.hbm [shape: f32[128,128], index: 6, kind: input, shape index: {}]   ;;  %s1141_s7 = inlined_call_operand.hbm [shape: f32[1,128], index: 7, kind: input, shape index: {}]   ;;  %s1142_s8 = inlined_call_operand.hbm [shape: f32[4,128], index: 8, kind: output, shape index: {}]  }
   0x1   :  { %14 = vsyncpa [#allocation7], 0 }
   0x2   :  { %15 = vsyncpa [#allocation10], 0 }
   0x3   :  { %16 = vsyncpa [#allocation13], 0 }
   0x4   :  { %17 = vsyncpa [#allocation16], 0 }
   0x5   :  { %18 = vsyncpa [#allocation5], 0  ;;  %s909_s27 = smov [#allocation6]   ;;  %s910_s29 = smov [#allocation9]  }
   0x6   :  { %s36_s28 = sshll.u32 %s909_s27, 4  ;;  %s59_s30 = sshll.u32 %s910_s29, 4  ;;  %s37_s28 = int_to_ptr.vmem [resolvable:$true] %s36_s28  ;;  %s968_s30 = int_to_ptr.vmem [resolvable:$true] %s59_s30 }
   0x7   :  { %s699_s11 = scalar_lea.hbm %s1135_s1, 2048 }
   0x8   :  { %p700_p0 = scmp.ne.s32.totalorder %s1135_s1, %s699_s11  ;;  %p703_p1 = scmp.lt.u32.totalorder %s699_s11, %s1135_s1 }
   0xa   :  { %p705_p2 = pnand %p703_p1, %p700_p0 }
   0xc   :  { %708 = shalt.err (!%p705_p2)
}
   0xd   :  { %s709_s16 = scalar_lea.vmem %s37_s28, 2048  ;;  %p714_p4 = scmp.lt.s32.totalorder %s37_s28, %s37_s28 }
   0xe   :  { %p710_p3 = scmp.ne.s32.totalorder %s37_s28, %s709_s16  ;;  %p715_p5 = scmp.lt.s32.totalorder %s709_s16, %s709_s16 }
  0x10   :  { %p716_p6 = por %p715_p5, %p714_p4 }
  0x12   :  { %p717_p7 = pnand %p716_p6, %p710_p3 }
  0x14   :  { %720 = shalt.err (!%p717_p7)
}
  0x15   :  { %s911_s17 = smov 128   ;;  %s912_s18 = smov 8  }
  0x16   :  { %42 = dma.hbm_to_vmem [thread:$0]  %s1135_s1, 2048, %s37_s28, [#allocation7], %s911_s17, %s911_s17, %s912_s18  }
  0x17   :  { %s721_s23 = scalar_lea.hbm %s1137_s3, 16 }
  0x18   :  { %p722_p8 = scmp.ne.s32.totalorder %s1137_s3, %s721_s23  ;;  %p725_p9 = scmp.lt.u32.totalorder %s721_s23, %s1137_s3 }
  0x1a   :  { %p727_p10 = pnand %p725_p9, %p722_p8 }
  0x1c   :  { %730 = shalt.err (!%p727_p10)
}
  0x1d   :  { %s731_s29 = scalar_lea.vmem %s968_s30, 16  ;;  %s735_s1 = scalar_lea.vmem %s968_s30, 32 }
  0x1e   :  { %p732_p11 = scmp.ne.s32.totalorder %s968_s30, %s731_s29  ;;  %p736_p12 = scmp.lt.s32.totalorder %s968_s30, %s968_s30 }
  0x1f   :  { %p737_p13 = scmp.lt.s32.totalorder %s735_s1, %s731_s29 }
  0x21   :  { %p738_p0 = por %p737_p13, %p736_p12 }
  0x23   :  { %p739_p1 = pnand %p738_p0, %p732_p11 }
  0x25   :  { %742 = shalt.err (!%p739_p1)
}
  0x26   :  { %62 = dma.hbm_to_vmem [thread:$0]  %s1137_s3, 16, %s968_s30, [#allocation10]  }
  0x27   :  { %s913_s10 = smov [#allocation12]   ;;  %s914_s12 = smov [#allocation3]  }
  0x28   :  { %s81_s11 = sshll.u32 %s913_s10, 4  ;;  %s24_s13 = sshll.u32 %s914_s12, 4  ;;  %s82_s11 = int_to_ptr.vmem [resolvable:$true] %s81_s11  ;;  %s1003_s13 = int_to_ptr.vmem [resolvable:$true] %s24_s13 }
  0x29   :  { %s743_s16 = scalar_lea.hbm %s1139_s5, 16 }
  0x2a   :  { %p744_p2 = scmp.ne.s32.totalorder %s1139_s5, %s743_s16  ;;  %p747_p3 = scmp.lt.u32.totalorder %s743_s16, %s1139_s5 }
  0x2c   :  { %p749_p4 = pnand %p747_p3, %p744_p2 }
  0x2e   :  { %752 = shalt.err (!%p749_p4)
}
  0x2f   :  { %s753_s3 = scalar_lea.vmem %s82_s11, 16  ;;  %s757_s30 = scalar_lea.vmem %s82_s11, 32 }
  0x30   :  { %p754_p5 = scmp.ne.s32.totalorder %s82_s11, %s753_s3  ;;  %p758_p6 = scmp.lt.s32.totalorder %s82_s11, %s82_s11 }
  0x31   :  { %p759_p7 = scmp.lt.s32.totalorder %s757_s30, %s753_s3 }
  0x33   :  { %p760_p8 = por %p759_p7, %p758_p6 }
  0x35   :  { %p761_p9 = pnand %p760_p8, %p754_p5 }
  0x37   :  { %764 = shalt.err (!%p761_p9)
}
  0x38   :  { %84 = dma.hbm_to_vmem [thread:$0]  %s1139_s5, 16, %s82_s11, [#allocation13]  }
  0x39   :  { %s765_s27 = scalar_lea.hbm %s1134_s0, 1024 }
  0x3a   :  { %p766_p10 = scmp.ne.s32.totalorder %s1134_s0, %s765_s27  ;;  %p769_p11 = scmp.lt.u32.totalorder %s765_s27, %s1134_s0 }
  0x3c   :  { %p771_p12 = pnand %p769_p11, %p766_p10 }
  0x3e   :  { %774 = shalt.err (!%p771_p12)
}
  0x3f   :  { %s775_s10 = scalar_lea.vmem %s1003_s13, 1024  ;;  %p780_p0 = scmp.lt.s32.totalorder %s1003_s13, %s1003_s13 }
  0x40   :  { %p776_p13 = scmp.ne.s32.totalorder %s1003_s13, %s775_s10  ;;  %p781_p1 = scmp.lt.s32.totalorder %s775_s10, %s775_s10 }
  0x42   :  { %p782_p2 = por %p781_p1, %p780_p0 }
  0x44   :  { %p783_p3 = pnand %p782_p2, %p776_p13 }
  0x46   :  { %786 = shalt.err (!%p783_p3)
}
  0x47   :  { %30 = dma.hbm_to_vmem [thread:$0]  %s1134_s0, 1024, %s1003_s13, [#allocation4], %s911_s17, %s911_s17, %s912_s18  }
  0x48   :  { %s915_s12 = smov [#allocation8]   ;;  %s916_s15 = smov [#allocation11]  }
  0x49   :  { %s49_s14 = sshll.u32 %s915_s12, 4  ;;  %s68_s16 = sshll.u32 %s916_s15, 4  ;;  %s50_s14 = int_to_ptr.vmem [resolvable:$true] %s49_s14  ;;  %s1037_s16 = int_to_ptr.vmem [resolvable:$true] %s68_s16 }
  0x4a   :  { %s787_s21 = scalar_lea.hbm %s1136_s2, 16 }
  0x4b   :  { %p788_p4 = scmp.ne.s32.totalorder %s1136_s2, %s787_s21  ;;  %p791_p5 = scmp.lt.u32.totalorder %s787_s21, %s1136_s2 }
  0x4d   :  { %p793_p6 = pnand %p791_p5, %p788_p4 }
  0x4f   :  { %796 = shalt.err (!%p793_p6)
}
  0x50   :  { %s797_s0 = scalar_lea.vmem %s50_s14, 16  ;;  %s801_s13 = scalar_lea.vmem %s50_s14, 32 }
  0x51   :  { %p798_p7 = scmp.ne.s32.totalorder %s50_s14, %s797_s0  ;;  %p802_p8 = scmp.lt.s32.totalorder %s50_s14, %s50_s14 }
  0x52   :  { %p803_p9 = scmp.lt.s32.totalorder %s801_s13, %s797_s0 }
  0x54   :  { %p804_p10 = por %p803_p9, %p802_p8 }
  0x56   :  { %p805_p11 = pnand %p804_p10, %p798_p7 }
  0x58   :  { %808 = shalt.err (!%p805_p11)
}
  0x59   :  { %52 = dma.hbm_to_vmem [thread:$0]  %s1136_s2, 16, %s50_s14, [#allocation7]  }
  0x5a   :  { %s809_s29 = scalar_lea.hbm %s1138_s4, 256 }
  0x5b   :  { %p810_p12 = scmp.ne.s32.totalorder %s1138_s4, %s809_s29  ;;  %p813_p13 = scmp.lt.u32.totalorder %s809_s29, %s1138_s4 }
  0x5d   :  { %p815_p0 = pnand %p813_p13, %p810_p12 }
  0x5f   :  { %818 = shalt.err (!%p815_p0)
}
  0x60   :  { %s819_s5 = scalar_lea.vmem %s1037_s16, 256  ;;  %p824_p2 = scmp.lt.s32.totalorder %s1037_s16, %s1037_s16 }
  0x61   :  { %p820_p1 = scmp.ne.s32.totalorder %s1037_s16, %s819_s5  ;;  %p825_p3 = scmp.lt.s32.totalorder %s819_s5, %s819_s5 }
  0x63   :  { %p826_p4 = por %p825_p3, %p824_p2 }
  0x65   :  { %p827_p5 = pnand %p826_p4, %p820_p1 }
  0x67   :  { %830 = shalt.err (!%p827_p5)
}
  0x68   :  { %74 = dma.hbm_to_vmem [thread:$0]  %s1138_s4, 256, %s1037_s16, [#allocation10], %s911_s17, %s911_s17, %s912_s18  }
  0x69   :  { %s917_s12 = smov [#allocation14]   ;;  %s918_s15 = smov [#allocation15]  }
  0x6a   :  { %s90_s14 = sshll.u32 %s917_s12, 4  ;;  %s103_s19 = sshll.u32 %s918_s15, 4  ;;  %s91_s14 = int_to_ptr.vmem [resolvable:$true] %s90_s14  ;;  %s104_s19 = int_to_ptr.vmem [resolvable:$true] %s103_s19 }
  0x6b   :  { %s831_s22 = scalar_lea.hbm %s1140_s6, 2048 }
  0x6c   :  { %p832_p6 = scmp.ne.s32.totalorder %s1140_s6, %s831_s22  ;;  %p835_p7 = scmp.lt.u32.totalorder %s831_s22, %s1140_s6 }
  0x6e   :  { %p837_p8 = pnand %p835_p7, %p832_p6 }
  0x70   :  { %840 = shalt.err (!%p837_p8)
}
  0x71   :  { %s841_s4 = scalar_lea.vmem %s91_s14, 2048  ;;  %p846_p10 = scmp.lt.s32.totalorder %s91_s14, %s91_s14 }
  0x72   :  { %p842_p9 = scmp.ne.s32.totalorder %s91_s14, %s841_s4  ;;  %p847_p11 = scmp.lt.s32.totalorder %s841_s4, %s841_s4 }
  0x74   :  { %p848_p12 = por %p847_p11, %p846_p10 }
  0x76   :  { %p849_p13 = pnand %p848_p12, %p842_p9 }
  0x78   :  { %852 = shalt.err (!%p849_p13)
}
  0x79   :  { %96 = dma.hbm_to_vmem [thread:$0]  %s1140_s6, 2048, %s91_s14, [#allocation13], %s911_s17, %s911_s17, %s912_s18  }
  0x7a   :  { %s853_s26 = scalar_lea.hbm %s1141_s7, 16 }
  0x7b   :  { %p854_p0 = scmp.ne.s32.totalorder %s1141_s7, %s853_s26  ;;  %p857_p1 = scmp.lt.u32.totalorder %s853_s26, %s1141_s7 }
  0x7d   :  { %p859_p2 = pnand %p857_p1, %p854_p0 }
  0x7f   :  { %862 = shalt.err (!%p859_p2)
}
  0x80   :  { %s863_s9 = scalar_lea.vmem %s104_s19, 16  ;;  %s867_s10 = scalar_lea.vmem %s104_s19, 32 }
  0x81   :  { %p864_p3 = scmp.ne.s32.totalorder %s104_s19, %s863_s9  ;;  %p868_p4 = scmp.lt.s32.totalorder %s104_s19, %s104_s19 }
  0x82   :  { %p869_p5 = scmp.lt.s32.totalorder %s867_s10, %s863_s9 }
  0x84   :  { %p870_p6 = por %p869_p5, %p868_p4 }
  0x86   :  { %p871_p7 = pnand %p870_p6, %p864_p3 }
  0x88   :  { %874 = shalt.err (!%p871_p7)
}
  0x89   :  { %106 = dma.hbm_to_vmem [thread:$0]  %s1141_s7, 16, %s104_s19, [#allocation16]  }
  0x8a   :  { %897 = dma.done.wait [#allocation4], 1024  }
  0x8b   :  { %898 = vsyncadd [#allocation4], 4294966272 }
  0x8c   :  { %899 = dma.done.wait [#allocation7], 2064  }
  0x8d   :  { %900 = vsyncadd [#allocation7], 4294965232 }
  0x8e   :  { %901 = dma.done.wait [#allocation10], 272  }
  0x8f   :  { %902 = vsyncadd [#allocation10], 4294967024 }
  0x90   :  { %903 = dma.done.wait [#allocation13], 2064  }
  0x91   :  { %904 = vsyncadd [#allocation13], 4294965232 }
  0x92   :  { %905 = dma.done.wait [#allocation16], 16  }
  0x93   :  { %906 = vsyncadd [#allocation16], 4294967280  ;;  %v919_v0 = vmov 0.0|0.0   ;;  %v920_v1 = vmov 0.0   ;;  %vm921_vm0 = vmmov 0   ;;  %v190_v2 = vld [vmem:[#allocation6] sm:$0xff] }
  0x94   :  { %632 = vmatprep.subr.bf16.mxu0 %v919_v0  ;;  %135 = vst [vmem:[#allocation2] sm:$0xf] %v920_v1  ;;  %656 = vmatprep.subr.bf16.mxu1 %v919_v0  ;;  %v191_v3 = vld [vmem:[#allocation6 + $0x8] sm:$0xff]  ;;  %v192_v4 = vld [vmem:[#allocation6 + $0x10] sm:$0xff]  ;;  %v193_v6 = vld [vmem:[#allocation6 + $0x18] sm:$0xff]  ;;  %vm177_vm1 = vcmask 1041409  }
  0x95   :  { %587 = vmatprep.mubr.msk.f32.mxu0 %vm921_vm0, %v920_v1  ;;  %594 = vmatprep.mubr.msk.f32.mxu1 %vm921_vm0, %v920_v1  ;;  %v633_v5 = vpack.c.bf16 %v191_v3, %v190_v2  ;;  %v636_v7 = vpack.c.bf16 %v193_v6, %v192_v4  ;;  %v194_v8 = vld [vmem:[#allocation6 + $0x20] sm:$0xff]  ;;  %v195_v9 = vld [vmem:[#allocation6 + $0x28] sm:$0xff]  ;;  %v139_v12 = vld [vmem:[#allocation3 + $0x10] sm:$0xff]  ;;  %vm179_vm2 = vcmask 1042434   ;;  %vm181_vm3 = vcmask 1043459   ;;  %s922_s7 = smov [#allocation17]  }
  0x96   :  { %v137_v10 = vld [vmem:[#allocation3] sm:$0xff]  ;;  %v138_v11 = vld [vmem:[#allocation3 + $0x8] sm:$0xff]  ;;  %v140_v13 = vld [vmem:[#allocation3 + $0x18] sm:$0xff]  ;;  %v639_v14 = vpack.c.bf16 %v195_v9, %v194_v8  ;;  %vm299_vm4 = vcmask 125952   ;;  %vm342_vm5 = vcmask 130048   ;;  %s500_s18 = sshll.u32 %s922_s7, 4  ;;  %s501_s18 = int_to_ptr.vmem [resolvable:$true] %s500_s18 }
  0x97   :  { %634 = vmatpush3.bf16.msra.mxu0 %v633_v5  ;;  %v141_v15 = vld [vmem:[#allocation3 + $0x20] sm:$0xff]  ;;  %v142_v16 = vld [vmem:[#allocation3 + $0x28] sm:$0xff]  ;;  %v143_v17 = vld [vmem:[#allocation3 + $0x30] sm:$0xff]  ;;  %v145_v18 = vadd.f32 %v138_v11, %v137_v10  ;;  %v152_v19 = vadd.f32 %v140_v13, %v139_v12  ;;  %s875_s5 = scalar_lea.vmem %s501_s18, 64  ;;  %p880_p9 = scmp.lt.s32.totalorder %s501_s18, %s501_s18 }
  0x98   :  { %635 = vmatprep.subr.bf16.mxu0 %v919_v0  ;;  %v196_v20 = vld [vmem:[#allocation6 + $0x30] sm:$0xff]  ;;  %v197_v21 = vld [vmem:[#allocation6 + $0x38] sm:$0xff]  ;;  %v159_v23 = vadd.f32 %v142_v16, %v141_v15  ;;  %v198_v32 = vld [vmem:[#allocation6 + $0x40] sm:$0xff]  ;;  %p876_p8 = scmp.ne.s32.totalorder %s501_s18, %s875_s5  ;;  %p881_p10 = scmp.lt.s32.totalorder %s875_s5, %s875_s5 }
  0x99   :  { %v144_v22 = vld [vmem:[#allocation3 + $0x38] sm:$0xff]  ;;  %v146_v24 = vrot.slane %v145_v18, 4  ;;  %v153_v25 = vrot.slane %v152_v19, 4  ;;  %v642_v28 = vpack.c.bf16 %v197_v21, %v196_v20  ;;  %v199_v33 = vld [vmem:[#allocation6 + $0x48] sm:$0xff]  ;;  %v200_v43 = vld [vmem:[#allocation6 + $0x50] sm:$0xff] }
  0x9a   :  { %v166_v26 = vadd.f32 %v144_v22, %v143_v17  ;;  %v160_v27 = vrot.slane %v159_v23, 4  ;;  %v645_v39 = vpack.c.bf16 %v199_v33, %v198_v32  ;;  %v201_v44 = vld [vmem:[#allocation6 + $0x58] sm:$0xff]  ;;  %v202_v54 = vld [vmem:[#allocation6 + $0x60] sm:$0xff]  ;;  %v203_v55 = vld [vmem:[#allocation6 + $0x68] sm:$0xff]  ;;  %p882_p11 = por %p881_p10, %p880_p9 }
  0x9b   :  { %637 = vmatpush3.bf16.msra.mxu0 %v636_v7  ;;  %v147_v29 = vadd.f32 %v146_v24, %v145_v18  ;;  %v154_v30 = vadd.f32 %v153_v25, %v152_v19  ;;  %v648_v50 = vpack.c.bf16 %v201_v44, %v200_v43  ;;  %v136_v57 = vld [vmem:[#allocation2] sm:$0xf]  ;;  %v651_v61 = vpack.c.bf16 %v203_v55, %v202_v54  ;;  %v204_v63 = vld [vmem:[#allocation6 + $0x70] sm:$0xff]  ;;  %v208_v6 = vld [vmem:[#allocation11] sm:$0xff] }
  0x9c   :  { %638 = vmatprep.subr.bf16.mxu0 %v919_v0  ;;  %v167_v31 = vrot.slane %v166_v26, 4  ;;  %v161_v34 = vadd.f32 %v160_v27, %v159_v23  ;;  %v205_v2 = vld [vmem:[#allocation6 + $0x78] sm:$0xff]  ;;  %v209_v7 = vld [vmem:[#allocation11 + $0x8] sm:$0xff]  ;;  %v513_v32 = vld [vmem:[#allocation8] ss:$0 sm:$0xff]  ;;  %p883_p12 = pnand %p882_p11, %p876_p8 }
  0x9d   :  { %v148_v35 = vrot.slane %v147_v29, 2  ;;  %v155_v36 = vrot.slane %v154_v30, 2  ;;  %v654_v4 = vpack.c.bf16 %v205_v2, %v204_v63  ;;  %v657_v8 = vpack.c.bf16 %v209_v7, %v208_v6  ;;  %v215_v43 = vld [vmem:[#allocation14 + $0x20] sm:$0xff]  ;;  %v216_v44 = vld [vmem:[#allocation14 + $0x28] sm:$0xff] }
  0x9e   :  { %v168_v37 = vadd.f32 %v167_v31, %v166_v26  ;;  %v162_v38 = vrot.slane %v161_v34, 2  ;;  %v223_v54 = vld [vmem:[#allocation14 + $0x60] sm:$0xff]  ;;  %v224_v55 = vld [vmem:[#allocation14 + $0x68] sm:$0xff] }
  0x9f   :  { %640 = vmatpush3.bf16.msra.mxu0 %v639_v14  ;;  %v149_v40 = vadd.f32 %v148_v35, %v147_v29  ;;  %v156_v41 = vadd.f32 %v155_v36, %v154_v30  ;;  %658 = vmatpush3.bf16.msra.mxu1 %v657_v8  ;;  %v212_v35 = vld [vmem:[#allocation14 + $0x8] sm:$0xff] }
  0xa0   :  { %641 = vmatprep.subr.bf16.mxu0 %v919_v0  ;;  %v169_v42 = vrot.slane %v168_v37, 2  ;;  %v163_v45 = vadd.f32 %v162_v38, %v161_v34  ;;  %659 = vmatprep.subr.bf16.mxu1 %v919_v0  ;;  %v211_v34 = vld [vmem:[#allocation14] sm:$0xff]  ;;  %v514_v36 = vld [vmem:[#allocation9] ss:$0 sm:$0xff] }
  0xa1   :  { %v150_v46 = vrot.slane %v149_v40, 1  ;;  %v157_v47 = vrot.slane %v156_v41, 1  ;;  %v660_v38 = vpack.c.bf16 %v212_v35, %v211_v34 }
  0xa2   :  { %v170_v48 = vadd.f32 %v169_v42, %v168_v37  ;;  %v164_v49 = vrot.slane %v163_v45, 1 }
  0xa3   :  { %643 = vmatpush3.bf16.msra.mxu0 %v642_v28  ;;  %v151_v51 = vadd.f32 %v150_v46, %v149_v40  ;;  %v158_v52 = vadd.f32 %v157_v47, %v156_v41  ;;  %v213_v40 = vld [vmem:[#allocation14 + $0x10] sm:$0xff]  ;;  %v214_v41 = vld [vmem:[#allocation14 + $0x18] sm:$0xff] }
  0xa4   :  { %644 = vmatprep.subr.bf16.mxu0 %v919_v0  ;;  %v171_v53 = vrot.slane %v170_v48, 1  ;;  %v165_v56 = vadd.f32 %v164_v49, %v163_v45  ;;  %v663_v42 = vpack.c.bf16 %v214_v41, %v213_v40  ;;  %v666_v45 = vpack.c.bf16 %v216_v44, %v215_v43  ;;  %v217_v46 = vld [vmem:[#allocation14 + $0x30] sm:$0xff]  ;;  %v218_v47 = vld [vmem:[#allocation14 + $0x38] sm:$0xff]  ;;  %v219_v49 = vld [vmem:[#allocation14 + $0x40] sm:$0xff] }
  0xa5   :  { %v178_v59 = vsel %vm177_vm1, %v158_v52, %v151_v51  ;;  %v222_v52 = vld [vmem:[#allocation14 + $0x58] sm:$0xff] }
  0xa6   :  { %v172_v58 = vadd.f32 %v171_v53, %v170_v48  ;;  %v180_v60 = vsel %vm179_vm2, %v165_v56, %v178_v59  ;;  %v669_v48 = vpack.c.bf16 %v218_v47, %v217_v46  ;;  %v678_v56 = vpack.c.bf16 %v224_v55, %v223_v54 }
  0xa7   :  { %646 = vmatpush3.bf16.msra.mxu0 %v645_v39 }
  0xa8   :  { %647 = vmatprep.subr.bf16.mxu0 %v919_v0  ;;  %v182_v62 = vsel %vm181_vm3, %v172_v58, %v180_v60  ;;  %v226_v58 = vld [vmem:[#allocation14 + $0x78] sm:$0xff] }
  0xa9   :  { %v184_v3 = vadd.f32 %v182_v62, %v136_v57  ;;  %v225_v57 = vld [vmem:[#allocation14 + $0x70] sm:$0xff]  ;;  %v515_v60 = vld [vmem:[#allocation12] ss:$0 sm:$0xff] }
  0xaa   :  { %v681_v59 = vpack.c.bf16 %v226_v58, %v225_v57 }
  0xab   :  { %649 = vmatpush3.bf16.msra.mxu0 %v648_v50  ;;  %185 = vst [vmem:[#allocation2] sm:$0xf] %v184_v3  ;;  %v220_v50 = vld [vmem:[#allocation14 + $0x48] sm:$0xff]  ;;  %v517_v3 = vld [vmem:[#allocation15] ss:$0 sm:$0xff] }
  0xac   :  { %650 = vmatprep.subr.bf16.mxu0 %v919_v0  ;;  %v672_v51 = vpack.c.bf16 %v220_v50, %v219_v49 }
  0xaf   :  { %652 = vmatpush3.bf16.msra.mxu0 %v651_v61 }
  0xb0   :  { %653 = vmatprep.subr.bf16.mxu0 %v919_v0 }
  0xb2   :  { %v189_v5 = vld [vmem:[#allocation2] sm:$0xf] }
  0xb3   :  { %655 = vmatpush3.bf16.msra.mxu0 %v654_v4 }
  0xb6   :  { %588 = vmatmul.mubr.f32.vlgmr.msra.gmra.mrb[0].mxu0 %v189_v5 }
 0x189   :  { %v294_v9 = vpop.f32.mrb[0].mxu0 }
 0x18a   :  { %v298_v10 = vmul.f32 0.0078125, %v294_v9  ;;  %v589_v11 = vpop.f32.mrb[1].mxu0 }
 0x18c   :  { %v300_v12 = vsel %vm299_vm4, %v298_v10, 0.0 }
 0x18d   :  { %v301_v13 = vrot.slane %v300_v12, 4 }
 0x18f   :  { %v302_v14 = vadd.f32 %v301_v13, %v300_v12 }
 0x191   :  { %v303_v15 = vrot.slane %v302_v14, 2 }
 0x193   :  { %v304_v16 = vadd.f32 %v303_v15, %v302_v14 }
 0x195   :  { %v305_v17 = vrot.slane %v304_v16, 1 }
 0x197   :  { %v306_v18 = vadd.f32 %v305_v17, %v304_v16 }
 0x199   :  { %v308_v19 = vmul.f32 0.25, %v306_v18 }
 0x19b   :  { %v309_v20 = vsub.f32 %v298_v10, %v308_v19 }
 0x19d   :  { %v310_v21 = vmul.f32 %v309_v20, %v309_v20 }
 0x19f   :  { %v311_v22 = vsel %vm299_vm4, %v310_v21, 0.0 }
 0x1a0   :  { %v312_v23 = vrot.slane %v311_v22, 4 }
 0x1a2   :  { %v313_v24 = vadd.f32 %v312_v23, %v311_v22 }
 0x1a4   :  { %v314_v25 = vrot.slane %v313_v24, 2 }
 0x1a6   :  { %v315_v26 = vadd.f32 %v314_v25, %v313_v24 }
 0x1a8   :  { %v316_v27 = vrot.slane %v315_v26, 1 }
 0x1aa   :  { %v317_v28 = vadd.f32 %v316_v27, %v315_v26 }
 0x1ac   :  { %v318_v29 = vmul.f32 0.25, %v317_v28 }
 0x1ae   :  { %v319_v30 = vadd.f32 1e-05, %v318_v29 }
 0x1b0   :  { %697 = vrsqrt.f32 %v319_v30 }
 0x1ba   :  { %v698_v31 = vpop.eup %697 }
 0x1bb   :  { %v321_v33 = vmul.f32 %v698_v31, %v309_v20 }
 0x1bd   :  { %v328_v37 = vmul.f32 %v513_v32, %v321_v33 }
 0x1bf   :  { %v335_v39 = vadd.f32 %v514_v36, %v328_v37 }
 0x1c1   :  { %595 = vmatmul.mubr.msk.f32.vlgmr.msra.gmra.mrb[0].mxu1 %vm342_vm5, %v335_v39 }
 0x1c2   :  { %661 = vmatpush3.bf16.msra.mxu1 %v660_v38  ;;  %629 = vmatprep.mubr.msk.f32.mxu1 %vm921_vm0, %v920_v1  ;;  %v221_v1 = vld [vmem:[#allocation14 + $0x50] sm:$0xff] }
 0x1c3   :  { %662 = vmatprep.subr.bf16.mxu1 %v919_v0  ;;  %v675_v53 = vpack.c.bf16 %v222_v52, %v221_v1 }
 0x1c6   :  { %664 = vmatpush3.bf16.msra.mxu1 %v663_v42 }
 0x1c7   :  { %665 = vmatprep.subr.bf16.mxu1 %v919_v0 }
 0x1ca   :  { %667 = vmatpush3.bf16.msra.mxu1 %v666_v45 }
 0x1cb   :  { %668 = vmatprep.subr.bf16.mxu1 %v919_v0 }
 0x1ce   :  { %670 = vmatpush3.bf16.msra.mxu1 %v669_v48 }
 0x1cf   :  { %671 = vmatprep.subr.bf16.mxu1 %v919_v0 }
 0x1d2   :  { %673 = vmatpush3.bf16.msra.mxu1 %v672_v51 }
 0x1d3   :  { %674 = vmatprep.subr.bf16.mxu1 %v919_v0 }
 0x1d6   :  { %676 = vmatpush3.bf16.msra.mxu1 %v675_v53 }
 0x1d7   :  { %677 = vmatprep.subr.bf16.mxu1 %v919_v0 }
 0x1da   :  { %679 = vmatpush3.bf16.msra.mxu1 %v678_v56 }
 0x1db   :  { %680 = vmatprep.subr.bf16.mxu1 %v919_v0 }
 0x1de   :  { %682 = vmatpush3.bf16.msra.mxu1 %v681_v59 }
 0x294   :  { %v412_v61 = vpop.f32.mrb[0].mxu1 }
 0x295   :  { %v413_v62 = vadd.f32 %v515_v60, %v412_v61  ;;  %v596_v63 = vpop.f32.mrb[1].mxu1 }
 0x297   :  { %v416_v2 = vmax.f32 %v413_v62, 0.0 }
 0x299   :  { %630 = vmatmul.mubr.f32.vlgmr.msra.gmra.mrb[2].mxu1 %v416_v2 }
 0x36c   :  { %v489_v4 = vpop.f32.mrb[2].mxu1 }
 0x36d   :  { %v490_v5 = vadd.f32 %v517_v3, %v489_v4  ;;  %v631_v6 = vpop.f32.mrb[3].mxu1 }
 0x36f   :  { %493 = vst [vmem:[#allocation17] sm:$0xf] %v490_v5 }
 0x370   :  { %886 = shalt.err (!%p883_p12)
}
 0x371   :  { %s887_s12 = scalar_lea.hbm %s1142_s8, 64 }
 0x372   :  { %p888_p13 = scmp.ne.s32.totalorder %s1142_s8, %s887_s12  ;;  %p891_p0 = scmp.lt.u32.totalorder %s887_s12, %s1142_s8 }
 0x374   :  { %p893_p1 = pnand %p891_p0, %p888_p13 }
 0x376   :  { %896 = shalt.err (!%p893_p1)
}
 0x377   :  { %503 = dma.vmem_to_hbm [thread:$0]  %s501_s18, 64, %s1142_s8, [#allocation5]  }
 0x378   :  { %907 = dma.done.wait [#allocation5], 64  }
 0x379   :  { %908 = vsyncadd [#allocation5], 4294967232 }
 0x37a   :  { %507 = vsyncpa [#allocation4], 1 }
 0x37b   :  { %508 = vsyncpa [#allocation7], 1 }
 0x37c   :  { %509 = vsyncpa [#allocation10], 1 }
 0x37d   :  { %510 = vsyncpa [#allocation13], 1 }
 0x37e   :  { %511 = vsyncpa [#allocation16], 1 }
 0x37f   :  { %512 = vsyncpa [#allocation5], 1 }

</bundles_post_ra>
